<compile_context>
chip_gen: v5e
topology: v5e:2x2
jax: 0.10.0
libtpu: 0.0.40
codegen_flags: <defaults>
</compile_context>

<pallas_src>
import functools
import numpy as np
import jax
import jax.numpy as jnp
from jax.experimental import pallas as pl
from jax.experimental.pallas import tpu as pltpu


def _bilinear_matrix(out_size: int, in_size: int) -> np.ndarray:
    """Interpolation matrix matching torch.nn.functional.interpolate
    (mode='bilinear', align_corners=False): out = W @ in, W: (out, in)."""
    scale = in_size / out_size
    w = np.zeros((out_size, in_size), dtype=np.float32)
    for i in range(out_size):
        src = (i + 0.5) * scale - 0.5
        src = max(src, 0.0)                      # PyTorch clamps negative src to 0
        i0 = min(int(np.floor(src)), in_size - 1)
        i1 = min(i0 + 1, in_size - 1)
        l1 = np.float32(src - i0)
        w[i, i0] += np.float32(1.0) - l1
        w[i, i1] += l1
    return w


# ---------------------------------------------------------------------------
# Fused kernel: per (batch, H-tile) step
#   inputs : mask (1,Hm,Wm) f32, rw tile (TH,Hm) f32, cw^T (Wm,W) f32,
#            act tile (1,C,TH,W) native dtype
#   output : (1,2,C) f32  [row 0: features_inside, row 1: features_outside]
#   scratch: num_in (1,C), sum_a (1,C), den_in (1,1) f32 accumulators
# ---------------------------------------------------------------------------
def _fused_kernel(mask_ref, rw_ref, cwt_ref, act_ref, out_ref,
                  num_ref, suma_ref, den_ref, *, eps, h, w, th, has_tail):
    j = pl.program_id(1)

    @pl.when(j == 0)
    def _init():
        num_ref[...] = jnp.zeros_like(num_ref)
        suma_ref[...] = jnp.zeros_like(suma_ref)
        den_ref[...] = jnp.zeros_like(den_ref)

    # Bilinear-resized mask rows for this tile (zero in tail-padding rows,
    # because the padded rw rows are all-zero).  Tiny matmuls; hide under DMA.
    m_rows = jnp.dot(rw_ref[...], mask_ref[0],
                     preferred_element_type=jnp.float32)          # (TH, Wm)
    m_tile = jnp.dot(m_rows, cwt_ref[...],
                     preferred_element_type=jnp.float32)          # (TH, W)

    # Cast per tile inside the kernel; HBM read stays at native width.
    a = act_ref[0].astype(jnp.float32)                            # (C, TH, W)
    if has_tail:
        row = jax.lax.broadcasted_iota(jnp.int32, (th, w), 0) + j * th
        valid = (row < h)[None, :, :]
        a = jnp.where(valid, a, jnp.float32(0.0))

    am = a * m_tile[None, :, :]
    num_ref[...] += jnp.sum(jnp.sum(am, axis=2), axis=1)[None, :]     # (1, C)
    suma_ref[...] += jnp.sum(jnp.sum(a, axis=2), axis=1)[None, :]     # (1, C)
    den_ref[...] += jnp.sum(m_tile, keepdims=True)                    # (1, 1)

    @pl.when(j == pl.num_programs(1) - 1)
    def _finalize():
        d_in = den_ref[...]                                           # (1, 1)
        hw = jnp.float32(h * w)
        fin = num_ref[...] / (d_in + eps)                             # (1, C)
        fout = (suma_ref[...] - num_ref[...]) / ((hw - d_in) + eps)   # (1, C)
        out_ref[0] = jnp.concatenate([fin, fout], axis=0)             # (2, C)


def _choose_tile_rows(c, h, w, itemsize, max_tile_bytes):
    """Largest H-tile (multiple of the sublane packing) within the byte budget."""
    row_bytes = max(1, c * w * itemsize)
    max_rows = max_tile_bytes // row_bytes
    if max_rows >= h:
        return h
    sub = max(8, 32 // itemsize)          # 8 for f32, 16 for bf16, 32 for int8
    th = (max_rows // sub) * sub
    if th < sub:
        th = sub
    return h if th >= h else th


def _fused_level(mask3, act, eps, max_tile_bytes):
    b, hm, wm = mask3.shape
    _, c, h, w = act.shape
    itemsize = np.dtype(act.dtype).itemsize

    th = _choose_tile_rows(c, h, w, itemsize, max_tile_bytes)
    n_h = (h + th - 1) // th
    has_tail = (h % th) != 0

    rw = _bilinear_matrix(h, hm)                              # (H, Hm)
    if n_h * th > h:                                          # zero-pad tail rows
        rw = np.concatenate(
            [rw, np.zeros((n_h * th - h, hm), np.float32)], axis=0)
    cwt = np.ascontiguousarray(_bilinear_matrix(w, wm).T)     # (Wm, W)

    kernel = functools.partial(_fused_kernel, eps=float(eps),
                               h=h, w=w, th=th, has_tail=has_tail)
    out = pl.pallas_call(
        kernel,
        out_shape=jax.ShapeDtypeStruct((b, 2, c), jnp.float32),
        grid=(b, n_h),
        in_specs=[
            pl.BlockSpec((1, hm, wm), lambda bb, j: (bb, 0, 0)),
            pl.BlockSpec((th, hm), lambda bb, j: (j, 0)),
            pl.BlockSpec((wm, w), lambda bb, j: (0, 0)),
            pl.BlockSpec((1, c, th, w), lambda bb, j: (bb, 0, j, 0)),
        ],
        out_specs=pl.BlockSpec((1, 2, c), lambda bb, j: (bb, 0, 0)),
        scratch_shapes=[
            pltpu.VMEM((1, c), jnp.float32),   # num_in accumulator
            pltpu.VMEM((1, c), jnp.float32),   # sum_a accumulator
            pltpu.VMEM((1, 1), jnp.float32),   # den_in accumulator
        ],
        compiler_params=pltpu.CompilerParams(
            dimension_semantics=("parallel", "arbitrary")),
    )(mask3, jnp.asarray(rw), jnp.asarray(cwt), act)
    return out                                               # (B, 2, C) f32


# ---------------------------------------------------------------------------
# Wrapper (glue only: parameter setup, output split)
# ---------------------------------------------------------------------------
def mask_to_features(mask, activations, eps=1e-5, max_tile_bytes=2 * 1024 * 1024):
    """Equivalent of Mask_to_features.forward.

    mask: (B, 1, Hm, Wm); activations: list of (B, C_i, H_i, W_i).
    Returns (features_inside, features_outside): lists of (B, C_i, 1) float32.
    """
    mask3 = mask[:, 0, :, :].astype(jnp.float32)              # (B, Hm, Wm)
    feats_in, feats_out = [], []
    for act in activations:
        out = _fused_level(mask3, act, eps, max_tile_bytes)   # (B, 2, C)
        feats_in.append(out[:, 0, :, None])
        feats_out.append(out[:, 1, :, None])
    return feats_in, feats_out


# Pure-JAX reference of the same math (for correctness check of the kernels).
def _reference(mask, activations, eps=1e-5):
    _, _, hm, wm = mask.shape
    mask3 = mask[:, 0].astype(jnp.float32)
    fin, fout = [], []
    for act in activations:
        _, _, h, w = act.shape
        rw = jnp.asarray(_bilinear_matrix(h, hm))
        cw = jnp.asarray(_bilinear_matrix(w, wm))
        m = jnp.einsum('hH,bHW,wW->bhw', rw, mask3, cw)       # (B, H, W)
        act32 = act.astype(jnp.float32)
        num_in = jnp.sum(act32 * m[:, None], axis=(2, 3))
        den_in = jnp.sum(m, axis=(1, 2))[:, None]
        fin.append((num_in / (den_in + eps))[..., None])
        num_out = jnp.sum(act32 * (1.0 - m[:, None]), axis=(2, 3))
        den_out = jnp.sum(1.0 - m, axis=(1, 2))[:, None]
        fout.append((num_out / (den_out + eps))[..., None])
    return fin, fout


if __name__ == "__main__":
    key = jax.random.PRNGKey(0)
    k_mask, k_a0, k_a1, k_a2 = jax.random.split(key, 4)

    B = 2
    mask = jax.random.uniform(k_mask, (B, 1, 16, 16), dtype=jnp.float32)
    activations = [
        jax.random.normal(k_a0, (B, 4, 16, 16), dtype=jnp.float32),
        jax.random.normal(k_a1, (B, 8, 8, 8), dtype=jnp.float32).astype(jnp.bfloat16),
        jax.random.normal(k_a2, (B, 4, 20, 24), dtype=jnp.float32),
    ]

    ref_in, ref_out = _reference(mask, activations, eps=1e-5)

    def _check(fi_list, fo_list):
        for fi, fo, ri, ro in zip(fi_list, fo_list, ref_in, ref_out):
            assert fi.shape == ri.shape and fo.shape == ro.shape
            np.testing.assert_allclose(np.asarray(fi), np.asarray(ri),
                                       rtol=1e-3, atol=1e-3)
            np.testing.assert_allclose(np.asarray(fo), np.asarray(ro),
                                       rtol=1e-3, atol=1e-3)

    # Default path (each level fits in a single H tile).
    feats_in, feats_out = mask_to_features(mask, activations, eps=1e-5)
    jax.block_until_ready(feats_in)
    jax.block_until_ready(feats_out)
    _check(feats_in, feats_out)

    # Forced-tiling path (exercises the H-tiled reduction grid, accumulator
    # init/finalize, zero-padded rw rows and tail-row masking).
    feats_in_t, feats_out_t = mask_to_features(mask, activations, eps=1e-5,
                                               max_tile_bytes=2048)
    jax.block_until_ready(feats_in_t)
    jax.block_until_ready(feats_out_t)
    _check(feats_in_t, feats_out_t)

    print("KERNEL_OK")
</pallas_src>

<mosaic_0001>
module attributes {stable_mosaic.version = 11 : i64} {
  func.func @_fused_kernel(%arg0: i32, %arg1: i32, %arg2: memref<1x16x16xf32, #tpu.memory_space<vmem>>, %arg3: memref<16x16xf32, #tpu.memory_space<vmem>>, %arg4: memref<16x16xf32, #tpu.memory_space<vmem>>, %arg5: memref<1x4x16x16xf32, #tpu.memory_space<vmem>>, %arg6: memref<1x2x4xf32, #tpu.memory_space<vmem>>, %arg7: memref<1x4xf32, #tpu.memory_space<vmem>>, %arg8: memref<1x4xf32, #tpu.memory_space<vmem>>, %arg9: memref<1x1xf32, #tpu.memory_space<vmem>>) attributes {dimension_semantics = [#tpu.dimension_semantics<parallel>, #tpu.dimension_semantics<arbitrary>], iteration_bounds = array<i64: 2, 1>, scalar_prefetch = 0 : i64, scratch_operands = 3 : i64, tpu.core_type = #tpu.core_type<tc>, window_params = [{transform_indices = @transform_0, window_bounds = array<i64: 1, 16, 16>}, {transform_indices = @transform_1, window_bounds = array<i64: 16, 16>}, {pipeline_mode = #tpu.pipeline_mode<synchronous>, transform_indices = @transform_2, window_bounds = array<i64: 16, 16>}, {transform_indices = @transform_3, window_bounds = array<i64: 1, 4, 16, 16>}, {transform_indices = @transform_4, window_bounds = array<i64: 1, 2, 4>}]} {
    %c0_i32 = arith.constant 0 : i32
    %0 = arith.cmpi eq, %arg1, %c0_i32 : i32
    %1 = arith.extui %0 : i1 to i32
    %c0_i32_0 = arith.constant 0 : i32
    %2 = arith.cmpi ne, %1, %c0_i32_0 : i32
    scf.if %2 {
      %cst_31 = arith.constant 0.000000e+00 : f32
      %37 = vector.broadcast %cst_31 : f32 to vector<1x4xf32>
      %c0_32 = arith.constant 0 : index
      %c0_33 = arith.constant 0 : index
      %38 = vector.load %arg7[%c0_32, %c0_33] : memref<1x4xf32, #tpu.memory_space<vmem>>, vector<1x4xf32>
      tpu.vector_store %arg7[%c0_32, %c0_33], %37 {strides = array<i32>} : memref<1x4xf32, #tpu.memory_space<vmem>>, vector<1x4xf32>,
      %cst_34 = arith.constant 0.000000e+00 : f32
      %39 = vector.broadcast %cst_34 : f32 to vector<1x4xf32>
      %c0_35 = arith.constant 0 : index
      %c0_36 = arith.constant 0 : index
      %40 = vector.load %arg8[%c0_35, %c0_36] : memref<1x4xf32, #tpu.memory_space<vmem>>, vector<1x4xf32>
      tpu.vector_store %arg8[%c0_35, %c0_36], %39 {strides = array<i32>} : memref<1x4xf32, #tpu.memory_space<vmem>>, vector<1x4xf32>,
      %cst_37 = arith.constant 0.000000e+00 : f32
      %41 = vector.broadcast %cst_37 : f32 to vector<1x1xf32>
      %c0_38 = arith.constant 0 : index
      %c0_39 = arith.constant 0 : index
      %42 = vector.load %arg9[%c0_38, %c0_39] : memref<1x1xf32, #tpu.memory_space<vmem>>, vector<1x1xf32>
      tpu.vector_store %arg9[%c0_38, %c0_39], %41 {strides = array<i32>} : memref<1x1xf32, #tpu.memory_space<vmem>>, vector<1x1xf32>,
    } else {
    }
    %c0 = arith.constant 0 : index
    %c0_1 = arith.constant 0 : index
    %3 = vector.load %arg3[%c0, %c0_1] : memref<16x16xf32, #tpu.memory_space<vmem>>, vector<16x16xf32>
    %c0_2 = arith.constant 0 : index
    %c0_3 = arith.constant 0 : index
    %c0_4 = arith.constant 0 : index
    %4 = vector.load %arg2[%c0_2, %c0_3, %c0_4] : memref<1x16x16xf32, #tpu.memory_space<vmem>>, vector<1x16x16xf32>
    %5 = vector.shape_cast %4 : vector<1x16x16xf32> to vector<16x16xf32>
    %cst = arith.constant dense<0.000000e+00> : vector<16x16xf32>
    %6 = tpu.matmul %3, %5, %cst {dimension_numbers = #tpu.dot_dimension_numbers<[1], [0], [0], [1], [0, 0, 1, 1], [], []>} : vector<16x16xf32>, vector<16x16xf32>, vector<16x16xf32> -> vector<16x16xf32>
    %c0_5 = arith.constant 0 : index
    %c0_6 = arith.constant 0 : index
    %7 = vector.load %arg4[%c0_5, %c0_6] : memref<16x16xf32, #tpu.memory_space<vmem>>, vector<16x16xf32>
    %cst_7 = arith.constant dense<0.000000e+00> : vector<16x16xf32>
    %8 = tpu.matmul %6, %7, %cst_7 {dimension_numbers = #tpu.dot_dimension_numbers<[1], [0], [0], [1], [0, 0, 1, 1], [], []>} : vector<16x16xf32>, vector<16x16xf32>, vector<16x16xf32> -> vector<16x16xf32>
    %c0_8 = arith.constant 0 : index
    %c0_9 = arith.constant 0 : index
    %c0_10 = arith.constant 0 : index
    %c0_11 = arith.constant 0 : index
    %9 = vector.load %arg5[%c0_8, %c0_9, %c0_10, %c0_11] : memref<1x4x16x16xf32, #tpu.memory_space<vmem>>, vector<1x4x16x16xf32>
    %10 = vector.shape_cast %9 : vector<1x4x16x16xf32> to vector<4x16x16xf32>
    %11 = vector.shape_cast %8 : vector<16x16xf32> to vector<1x16x16xf32>
    %12 = vector.broadcast %11 : vector<1x16x16xf32> to vector<4x16x16xf32>
    %13 = arith.mulf %10, %12 : vector<4x16x16xf32>
    %c0_12 = arith.constant 0 : index
    %c0_13 = arith.constant 0 : index
    %14 = vector.load %arg7[%c0_12, %c0_13] : memref<1x4xf32, #tpu.memory_space<vmem>>, vector<1x4xf32>
    %cst_14 = arith.constant dense<0.000000e+00> : vector<4x16xf32>
    %15 = vector.multi_reduction <add>, %13, %cst_14 [2] : vector<4x16x16xf32> to vector<4x16xf32>
    %cst_15 = arith.constant dense<0.000000e+00> : vector<4xf32>
    %16 = vector.multi_reduction <add>, %15, %cst_15 [1] : vector<4x16xf32> to vector<4xf32>
    %17 = vector.shape_cast %16 : vector<4xf32> to vector<1x4xf32>
    %18 = arith.addf %14, %17 : vector<1x4xf32>
    %c0_16 = arith.constant 0 : index
    %c0_17 = arith.constant 0 : index
    %19 = vector.load %arg7[%c0_16, %c0_17] : memref<1x4xf32, #tpu.memory_space<vmem>>, vector<1x4xf32>
    tpu.vector_store %arg7[%c0_16, %c0_17], %18 {strides = array<i32>} : memref<1x4xf32, #tpu.memory_space<vmem>>, vector<1x4xf32>,
    %c0_18 = arith.constant 0 : index
    %c0_19 = arith.constant 0 : index
    %20 = vector.load %arg8[%c0_18, %c0_19] : memref<1x4xf32, #tpu.memory_space<vmem>>, vector<1x4xf32>
    %cst_20 = arith.constant dense<0.000000e+00> : vector<4x16xf32>
    %21 = vector.multi_reduction <add>, %10, %cst_20 [2] : vector<4x16x16xf32> to vector<4x16xf32>
    %cst_21 = arith.constant dense<0.000000e+00> : vector<4xf32>
    %22 = vector.multi_reduction <add>, %21, %cst_21 [1] : vector<4x16xf32> to vector<4xf32>
    %23 = vector.shape_cast %22 : vector<4xf32> to vector<1x4xf32>
    %24 = arith.addf %20, %23 : vector<1x4xf32>
    %c0_22 = arith.constant 0 : index
    %c0_23 = arith.constant 0 : index
    %25 = vector.load %arg8[%c0_22, %c0_23] : memref<1x4xf32, #tpu.memory_space<vmem>>, vector<1x4xf32>
    tpu.vector_store %arg8[%c0_22, %c0_23], %24 {strides = array<i32>} : memref<1x4xf32, #tpu.memory_space<vmem>>, vector<1x4xf32>,
    %c0_24 = arith.constant 0 : index
    %c0_25 = arith.constant 0 : index
    %26 = vector.load %arg9[%c0_24, %c0_25] : memref<1x1xf32, #tpu.memory_space<vmem>>, vector<1x1xf32>
    %27 = vector.shape_cast %8 : vector<16x16xf32> to vector<1x16x16xf32>
    %cst_26 = arith.constant dense<0.000000e+00> : vector<1xf32>
    %28 = vector.multi_reduction <add>, %27, %cst_26 [1, 2] : vector<1x16x16xf32> to vector<1xf32>
    %29 = vector.shape_cast %28 : vector<1xf32> to vector<1x1x1xf32>
    %30 = vector.extract %29[0, 0, 0] : f32 from vector<1x1x1xf32>
    %31 = vector.broadcast %30 : f32 to vector<1x1xf32>
    %32 = arith.addf %26, %31 : vector<1x1xf32>
    %c0_27 = arith.constant 0 : index
    %c0_28 = arith.constant 0 : index
    %33 = vector.load %arg9[%c0_27, %c0_28] : memref<1x1xf32, #tpu.memory_space<vmem>>, vector<1x1xf32>
    tpu.vector_store %arg9[%c0_27, %c0_28], %32 {strides = array<i32>} : memref<1x1xf32, #tpu.memory_space<vmem>>, vector<1x1xf32>,
    %c0_i32_29 = arith.constant 0 : i32
    %34 = arith.cmpi eq, %arg1, %c0_i32_29 : i32
    %35 = arith.extui %34 : i1 to i32
    %c0_i32_30 = arith.constant 0 : i32
    %36 = arith.cmpi ne, %35, %c0_i32_30 : i32
    scf.if %36 {
      %c0_31 = arith.constant 0 : index
      %c0_32 = arith.constant 0 : index
      %37 = vector.load %arg9[%c0_31, %c0_32] : memref<1x1xf32, #tpu.memory_space<vmem>>, vector<1x1xf32>
      %c0_33 = arith.constant 0 : index
      %c0_34 = arith.constant 0 : index
      %38 = vector.load %arg7[%c0_33, %c0_34] : memref<1x4xf32, #tpu.memory_space<vmem>>, vector<1x4xf32>
      %cst_35 = arith.constant 9.99999974E-6 : f32
      %39 = vector.broadcast %cst_35 : f32 to vector<1x1xf32>
      %40 = arith.addf %37, %39 : vector<1x1xf32>
      %41 = vector.broadcast %40 : vector<1x1xf32> to vector<1x4xf32>
      %42 = arith.divf %38, %41 : vector<1x4xf32>
      %c0_36 = arith.constant 0 : index
      %c0_37 = arith.constant 0 : index
      %43 = vector.load %arg8[%c0_36, %c0_37] : memref<1x4xf32, #tpu.memory_space<vmem>>, vector<1x4xf32>
      %c0_38 = arith.constant 0 : index
      %c0_39 = arith.constant 0 : index
      %44 = vector.load %arg7[%c0_38, %c0_39] : memref<1x4xf32, #tpu.memory_space<vmem>>, vector<1x4xf32>
      %45 = arith.subf %43, %44 : vector<1x4xf32>
      %cst_40 = arith.constant 2.560000e+02 : f32
      %46 = vector.broadcast %cst_40 : f32 to vector<1x1xf32>
      %47 = arith.subf %46, %37 : vector<1x1xf32>
      %cst_41 = arith.constant 9.99999974E-6 : f32
      %48 = vector.broadcast %cst_41 : f32 to vector<1x1xf32>
      %49 = arith.addf %47, %48 : vector<1x1xf32>
      %50 = vector.broadcast %49 : vector<1x1xf32> to vector<1x4xf32>
      %51 = arith.divf %45, %50 : vector<1x4xf32>
      %52 = tpu.concatenate %42, %51 in 0 : vector<1x4xf32>, vector<1x4xf32> -> vector<2x4xf32>
      %c0_42 = arith.constant 0 : index
      %c0_43 = arith.constant 0 : index
      %c0_44 = arith.constant 0 : index
      %53 = vector.load %arg6[%c0_42, %c0_43, %c0_44] : memref<1x2x4xf32, #tpu.memory_space<vmem>>, vector<1x2x4xf32>
      %54 = vector.shape_cast %53 : vector<1x2x4xf32> to vector<2x4xf32>
      %55 = vector.shape_cast %52 : vector<2x4xf32> to vector<1x2x4xf32>
      tpu.vector_store %arg6[%c0_42, %c0_43, %c0_44], %55 {strides = array<i32>} : memref<1x2x4xf32, #tpu.memory_space<vmem>>, vector<1x2x4xf32>,
    } else {
    }
    return
  }
  func.func @transform_0(%arg0: i32, %arg1: i32) -> (i32, i32, i32) {
    %c0_i32 = arith.constant 0 : i32
    %c0_i32_0 = arith.constant 0 : i32
    %c0_i32_1 = arith.constant 0 : i32
    return %arg0, %c0_i32, %c0_i32_0 : i32, i32, i32
  }
  func.func @transform_1(%arg0: i32, %arg1: i32) -> (i32, i32) {
    %c0_i32 = arith.constant 0 : i32
    %c0_i32_0 = arith.constant 0 : i32
    return %arg1, %c0_i32 : i32, i32
  }
  func.func @transform_2(%arg0: i32, %arg1: i32) -> (i32, i32) {
    %c0_i32 = arith.constant 0 : i32
    %c0_i32_0 = arith.constant 0 : i32
    %c0_i32_1 = arith.constant 0 : i32
    return %c0_i32, %c0_i32_0 : i32, i32
  }
  func.func @transform_3(%arg0: i32, %arg1: i32) -> (i32, i32, i32, i32) {
    %c0_i32 = arith.constant 0 : i32
    %c0_i32_0 = arith.constant 0 : i32
    %c0_i32_1 = arith.constant 0 : i32
    return %arg0, %c0_i32, %arg1, %c0_i32_0 : i32, i32, i32, i32
  }
  func.func @transform_4(%arg0: i32, %arg1: i32) -> (i32, i32, i32) {
    %c0_i32 = arith.constant 0 : i32
    %c0_i32_0 = arith.constant 0 : i32
    %c0_i32_1 = arith.constant 0 : i32
    return %arg0, %c0_i32, %c0_i32_0 : i32, i32, i32
  }
}

</mosaic_0001>

<bundles_post_ra>
// kernel: tpu_custom_call.1
= control target key start
LH: loop header
LB: loop body
LE: loop exit
PB: predicated region body
PF: predicated region fallthrough
CT: control target
= control target key end

     0   :  { %s1402_s0 = inlined_call_operand.hbm [shape: f32[2,16,16], index: 0, kind: input, shape index: {}]   ;;  %s1403_s1 = inlined_call_operand.hbm [shape: f32[16,16], index: 1, kind: input, shape index: {}]   ;;  %s1404_s2 = inlined_call_operand.hbm [shape: f32[16,16], index: 2, kind: input, shape index: {}]   ;;  %s1405_s3 = inlined_call_operand.hbm [shape: f32[2,4,16,16], index: 3, kind: input, shape index: {}]   ;;  %s1406_s4 = inlined_call_operand.hbm [shape: f32[2,2,4], index: 4, kind: output, shape index: {}]  }
   0x1   :  { %1412 = sst [smem:[#allocation20_spill]] %s1403_s1 }
   0x2   :  { %1413 = sst [smem:[#allocation21_spill]] %s1404_s2 }
   0x3   :  { %9 = vsyncpa [#allocation6], 0 }
   0x4   :  { %11 = vsyncpa [#allocation6 + $0x1], 0 }
   0x5   :  { %12 = vsyncpa [#allocation9], 0 }
   0x6   :  { %13 = vsyncpa [#allocation12], 0 }
   0x7   :  { %15 = vsyncpa [#allocation12 + $0x1], 0 }
   0x8   :  { %16 = vsyncpa [#allocation7], 0 }
   0x9   :  { %18 = vsyncpa [#allocation7 + $0x1], 0  ;;  %s1155_s15 = smov 0   ;;  %s1157_s16 = smov 0  }
   0xa   :  { %s1159_s17 = smov 0   ;;  %s1161_s18 = smov 0  }
   0xb   :  { %s1163_s19 = smov 0   ;;  %s1165_s20 = smov 0  }
   0xc LB: > { %s779_s21 = sadd.s32 4294967295, %s1122_s20   ;;  %s780_s22 = sadd.s32 4294967294, %s1122_s20   ;;  %s1122_s20 = sphi %s1165_s20, %s24_s20   ;;  %s1118_s19 = sphi %s1163_s19, %s1433_s19   ;;  %s1114_s18 = sphi %s1161_s18, %s1432_s18   ;;  %s1110_s17 = sphi %s1159_s17, %s1431_s17   ;;  %s1106_s16 = sphi %s1157_s16, %s1430_s16   ;;  %s1102_s15 = sphi %s1155_s15, %s1429_s15  }
   0xd   : > { %p56_p0 = scmp.ne.s32.totalorder %s1106_s16, %s1102_s15  ;;  %p1189_p1 = scmp.eq.s32.totalorder %s779_s21, 0 }
   0xe   : > { %p1193_p2 = scmp.eq.s32.totalorder %s779_s21, 1  ;;  %p161_p3 = scmp.eq.s32.totalorder %s780_s22, 1 }
   0xf   : > { %p1199_p4 = por %p1189_p1, %p56_p0  ;;  %p781_p5 = scmp.ge.s32.totalorder %s1122_s20, 1 }
  0x10   : > { %p1204_p6 = por %p161_p3, %p56_p0  ;;  %p168_p7 = scmp.lt.s32.totalorder %s1122_s20, 3 }
  0x11   : > { %s1418_s1 = sld [smem:[#allocation20_spill]]  ;;  %s1124_s5 = smov [#allocation8]  }
  0x12   : > { %p1212_p8 = pnand %p781_p5, %p168_p7  ;;  %s184_s6 = sshll.u32 %s1124_s5, 4  ;;  %s185_s6 = int_to_ptr.vmem [resolvable:$true] %s184_s6 }
  0x13   : > { %p784_p11 = scmp.ge.s32.totalorder %s1122_s20, 2  ;;  %s1420_s2 = sld [smem:[#allocation21_spill]] }
  0x14   : > { %p827_p9 = pneg %p1212_p8  ;;  %s1407_s10 = smov 128  }
  0x15   : > { %s1409_s11 = smov 8   ;;  %s1127_s12 = smov [#allocation10]  }
  0x16   : > { %p828_p10 = pnand %p827_p9, %p1189_p1  ;;  %s198_s13 = sshll.u32 %s1127_s12, 4  ;;  %s199_s13 = int_to_ptr.vmem [resolvable:$true] %s198_s13 }
  0x17   : > { %s182_s29 = sshll.u32 %s1418_s1, 4  ;;  %s36_s14 = sadd.s32 1, %s1118_s19  ;;  %s183_s29 = int_to_ptr.hbm [resolvable:$true] %s182_s29 }
  0x18   : > { %830 = dma.hbm_to_vmem [thread:$0]  (!%p828_p10), %s183_s29, 256, %s185_s6, [#allocation9], %s1407_s10, %s1407_s10, %s1409_s11  }
  0x19   : > { %s196_s9 = sshll.u32 %s1420_s2, 4  ;;  %s43_s21 = sadd.s32 1, %s1110_s17  ;;  %s197_s9 = int_to_ptr.hbm [resolvable:$true] %s196_s9 }
  0x1a   : > { %833 = dma.hbm_to_vmem [thread:$0]  (!%p828_p10), %s197_s9, 256, %s199_s13, [#allocation9], %s1407_s10, %s1407_s10, %s1409_s11  }
  0x1b   : > { %p38_p12 = scmp.ge.s32.totalorder %s36_s14, 2  ;;  %p50_p13 = scmp.ne.s32.totalorder %s1110_s17, %s1106_s16 }
  0x1c   : > { %p51_p0 = scmp.eq.s32.totalorder %s1122_s20, 0  ;;  %p847_p3 = scmp.lt.s32.totalorder %s1122_s20, 2 }
  0x1d   : > { %s1435_s14 = smov (%p38_p12, %s36_s14), 0  ;;  %p1244_p7 = por %p1193_p2, %p50_p13 }
  0x1e   : > { %1421 = sst [smem:[#allocation18_spill]] %s1435_s14  ;;  %p1238_p5 = por %p51_p0, %p50_p13 }
  0x1f   : > { %s40_s28 = ssub.s32 %s1118_s19, %s1435_s14  ;;  %s212_s29 = sand.u32 1, %s1110_s17  }
  0x20   : > { %p41_p9 = scmp.eq.s32.totalorder %s40_s28, 0  ;;  %s785_s5 = sshll.u32 %s212_s29, 4 }
  0x21   : > { %s805_s6 = sshll.u32 %s1118_s19, 4  ;;  %s216_s10 = scalar_lea.vmem [#allocation5], %s785_s5 }
  0x22   : > { %s1253_s7 = scalar_select %p41_p9, %s1110_s17, %s43_s21  }
  0x23   : > { %s221_s12 = scalar_lea.hbm %s1402_s0, %s805_s6  ;;  %s224_s24 = sshll.u32 %s216_s10, 4  ;;  %s225_s24 = int_to_ptr.vmem [resolvable:$true] %s224_s24 }
  0x24   : > { %1424 = sst [smem:[#allocation19_spill]] %s1253_s7  ;;  %s222_s13 = sshll.u32 %s221_s12, 4  ;;  %s223_s13 = int_to_ptr.hbm [resolvable:$true] %s222_s13 }
  0x25   : > { %p835_p2 = pnand %p847_p3, %p1238_p5  ;;  %s788_s11 = sshll.u32 %s212_s29, 6 }
  0x26   : > { %s806_s1 = sshll.u32 %s1118_s19, 6  ;;  %s213_s2 = scalar_lea.sflag [#allocation6], %s212_s29 }
  0x27   : > { %s1425_s28 = smov 8   ;;  %s1426_s14 = smov 128  }
  0x28   : > { %837 = dma.hbm_to_vmem [thread:$0]  (!%p835_p2), %s223_s13, 256, %s225_s24, %s213_s2, %s1426_s14, %s1426_s14, %s1425_s28  }
  0x29   : > { %s245_s8 = scalar_lea.hbm %s1405_s3, %s806_s1  ;;  %s238_s6 = scalar_lea.vmem [#allocation11], %s788_s11 }
  0x2a   : > { %s248_s9 = sshll.u32 %s238_s6, 4  ;;  %s246_s5 = sshll.u32 %s245_s8, 4  ;;  %s249_s9 = int_to_ptr.vmem [resolvable:$true] %s248_s9  ;;  %s247_s5 = int_to_ptr.hbm [resolvable:$true] %s246_s5 }
  0x2b   : > { %s235_s10 = scalar_lea.sflag [#allocation12], %s212_s29  ;;  %260 = sbr.rel (%p1212_p8) target bundleno = 729 (0x2d9), region = 36 }
  0x2c   : > { %840 = dma.hbm_to_vmem [thread:$0]  (!%p835_p2), %s247_s5, 1024, %s249_s9, %s235_s10, %s1426_s14, %s1426_s14, %s1425_s28  }
  0x2d   : > { %s1275_s2 = sand.u32 (!%p1212_p8), 1, %s1106_s16  }
  0x2e   : > { %s792_s1 = sshll.u32 (!%p1212_p8), %s1275_s2, 4  ;;  %s263_s11 = scalar_lea.sflag (!%p1212_p8), [#allocation6], %s1275_s2 }
  0x2f   : > { %s266_s22 = scalar_lea.vmem (!%p1212_p8), [#allocation5], %s792_s1 }
  0x30   : > { %1085 = dma.done.wait (%p1199_p4), %s263_s11, 256  }
  0x31   : > { %1087 = vsyncadd (%p1199_p4), %s263_s11, 4294967040 }
  0x32   : > { %1089 = dma.done.wait (%p1189_p1), [#allocation9], 512  }
  0x33   : > { %1091 = vsyncadd (%p1189_p1), [#allocation9], 4294966784  ;;  %s795_s30 = sshll.u32 %s1275_s2, 6  ;;  %s283_s14 = scalar_lea.sflag [#allocation12], %s1275_s2 }
  0x34   : > { %s1289_s29 = scalar_lea.vmem [#allocation11], %s795_s30 }
  0x35   : > { %1093 = dma.done.wait (%p1199_p4), %s283_s14, 1024  }
  0x36   : > { %1095 = vsyncadd (%p1199_p4), %s283_s14, 4294966272  ;;  %v331_v0 = vld [vmem:[%s266_s22 + $0x8] sm:$0xff]  ;;  %v330_v1 = vld [vmem:[%s266_s22] sm:$0xff]  ;;  %vm332_vm0 = vcmask 130048   ;;  %v442_v53 = vlaneseq  ;;  %vm326_vm1 = vcmask 0   ;;  %v1128_v58 = vmov 0.0  }
  0x37   : > { %353 = vmatpush.msra.mxu0 %v331_v0  ;;  %807 = vmatpush.msra.mxu2 %v331_v0  ;;  %v328_v2 = vld [vmem:[#allocation8] sm:$0xff]  ;;  %v329_v3 = vld [vmem:[#allocation8 + $0x8] sm:$0xff]  ;;  %v363_v4 = vld [vmem:[#allocation10 + $0x8] sm:$0xff]  ;;  %327 = vst.msk [vmem:[#allocation4] sm:$0x1] %vm326_vm1, %v1128_v58  ;;  %vm447_vm2 = vcmask 130112  }
  0x38   : > { %384 = vmatpush.msra.mxu1 %v363_v4  ;;  %809 = vmatpush.msra.mxu3 %v363_v4  ;;  %v362_v5 = vld [vmem:[#allocation10] sm:$0xff]  ;;  %v397_v8 = vld [vmem:[%s1289_s29 + $0x20] sm:$0xff]  ;;  %v396_v23 = vld [vmem:[%s1289_s29 + $0x18] sm:$0xff]  ;;  %v1327_v59 = vand.u32 127, %v442_v53  ;;  %vm458_vm3 = vcmask 1041409   ;;  %vm460_vm4 = vcmask 1042434  }
  0x39   : > { %354 = vmatpush.msra.mxu0 %v330_v1  ;;  %808 = vmatpush.msra.mxu2 %v330_v1  ;;  %v395_v9 = vld [vmem:[%s1289_s29 + $0x10] sm:$0xff]  ;;  %v393_v10 = vld [vmem:[%s1289_s29] sm:$0xff]  ;;  %v394_v28 = vld [vmem:[%s1289_s29 + $0x8] sm:$0xff]  ;;  %v503_v40 = vsel %vm332_vm0, %v397_v8, 0.0  ;;  %v500_v42 = vsel %vm332_vm0, %v396_v23, 0.0  ;;  %vm462_vm5 = vcmask 1043459  }
  0x3a   : > { %797 = vmatmul.msk.f32.vlgmr.msra.gmra.mxu0 %vm332_vm0, %v328_v2  ;;  %798 = vmatmul.msk.f32.vlgmr.msra.gmra.mxu2 %vm332_vm0, %v329_v3  ;;  %v399_v18 = vld [vmem:[%s1289_s29 + $0x30] sm:$0xff]  ;;  %v497_v20 = vsel %vm332_vm0, %v395_v9, 0.0  ;;  %v494_v29 = vsel %vm332_vm0, %v394_v28, 0.0  ;;  %v400_v31 = vld [vmem:[%s1289_s29 + $0x38] sm:$0xff]  ;;  %v491_v32 = vsel %vm332_vm0, %v393_v10, 0.0  ;;  %v398_v35 = vld [vmem:[%s1289_s29 + $0x28] sm:$0xff] }
  0x3b   : > { %385 = vmatpush.msra.mxu1 %v362_v5  ;;  %810 = vmatpush.msra.mxu3 %v362_v5  ;;  %v506_v41 = vsel %vm332_vm0, %v398_v35, 0.0  ;;  %v512_v43 = vsel %vm332_vm0, %v400_v31, 0.0  ;;  %v509_v44 = vsel %vm332_vm0, %v399_v18, 0.0  ;;  %v445_v62 = vadd.s32 4294967288, %v1327_v59  ;;  %s796_s25 = sshll.u32 %s1275_s2, 1  ;;  %s802_s7 = sshll.u32 %s1114_s18, 1 }
  0x3c   : > { %vm465_vm6 = vcmask 125952   ;;  %vm323_vm7 = vcmask 24576   ;;  %s649_s24 = scalar_lea.hbm %s1406_s4, %s802_s7  ;;  %s316_s18 = scalar_lea.vmem [#allocation13], %s796_s25 }
  0x3d   : > { %325 = vst.msk [vmem:[#allocation3] sm:$0x1] %vm323_vm7, %v1128_v58  ;;  %s651_s28 = sshll.u32 %s316_s18, 4  ;;  %s653_s21 = sshll.u32 %s649_s24, 4  ;;  %s652_s28 = int_to_ptr.vmem [resolvable:$true] %s651_s28  ;;  %s654_s21 = int_to_ptr.hbm [resolvable:$true] %s653_s21 }
  0x3e   : > { %324 = vst.msk [vmem:[#allocation2] sm:$0x1] %vm323_vm7, %v1128_v58  ;;  %s639_s8 = scalar_lea.sflag [#allocation7], %s1275_s2  ;;  %s1046_s6 = sshra.s32 %s654_s21, 4  ;;  %s1047_s6 = int_to_ptr.hbm [resolvable:$true] %s1046_s6 }
  0x3f   : > { %s1048_s9 = scalar_lea.hbm %s1047_s6, 2  ;;  %s1052_s1 = scalar_lea.hbm %s1406_s4, 4 }
  0x40   : > { %p1049_p1 = scmp.ne.s32.totalorder %s1047_s6, %s1048_s9  ;;  %p1053_p10 = scmp.lt.s32.totalorder %s1047_s6, %s1406_s4 }
  0x41   : > { %p1054_p12 = scmp.lt.s32.totalorder %s1052_s1, %s1048_s9 }
  0x42   : > { %p1050_p4 = pnand %p1049_p1, %p1244_p7 }
  0x43   : > { %p1055_p13 = por %p1054_p12, %p1053_p10 }
  0x44   : > { %p1051_p8 = pneg %p1050_p4 }
  0x46   : > { %p1056_p0 = pnand %p1055_p13, %p1051_p8 }
  0xb7   : > { %v356_v6 = vpop.f32.mrf.mxu0 }
  0xb8   : > { %799 = vmatmul.msk.f32.vlgmr.msra.gmra.mxu1 %vm332_vm0, %v356_v6 }
  0xbd   : > { %v359_v7 = vpop.f32.mrf.mxu2 }
  0xbe   : > { %800 = vmatmul.msk.f32.vlgmr.msra.gmra.mxu3 %vm332_vm0, %v359_v7 }
 0x135   : > { %v387_v11 = vpop.f32.mrf.mxu1 }
 0x136   : > { %v405_v12 = vmul.f32 %v397_v8, %v387_v11  ;;  %v403_v13 = vmul.f32 %v395_v9, %v387_v11  ;;  %v401_v14 = vmul.f32 %v393_v10, %v387_v11  ;;  %v407_v19 = vmul.f32 %v399_v18, %v387_v11 }
 0x137   : > { %v563_v24 = vsel %vm332_vm0, %v387_v11, 0.0 }
 0x138   : > { %v422_v15 = vsel %vm332_vm0, %v405_v12, 0.0  ;;  %v416_v16 = vsel %vm332_vm0, %v403_v13, 0.0  ;;  %v410_v17 = vsel %vm332_vm0, %v401_v14, 0.0  ;;  %v428_v21 = vsel %vm332_vm0, %v407_v19, 0.0 }
 0x139   : > { %423 = vadd.xlane.f32.xlu2 %v422_v15  ;;  %417 = vadd.xlane.f32.xlu1 %v416_v16 }
 0x13a   : > { %411 = vadd.xlane.f32.xlu0 %v410_v17 }
 0x141   : > { %v390_v22 = vpop.f32.mrf.mxu3  ;;  %498 = vadd.xlane.f32.xlu2 %v497_v20  ;;  %429 = vadd.xlane.f32.xlu1 %v428_v21 }
 0x142   : > { %v564_v25 = vsel %vm332_vm0, %v390_v22, 0.0  ;;  %v404_v27 = vmul.f32 %v396_v23, %v390_v22  ;;  %v408_v33 = vmul.f32 %v400_v31, %v390_v22  ;;  %v402_v34 = vmul.f32 %v394_v28, %v390_v22 }
 0x143   : > { %v565_v26 = vadd.f32 %v564_v25, %v563_v24  ;;  %v406_v38 = vmul.f32 %v398_v35, %v390_v22 }
 0x144   : > { %v419_v30 = vsel %vm332_vm0, %v404_v27, 0.0  ;;  %v431_v36 = vsel %vm332_vm0, %v408_v33, 0.0  ;;  %v413_v37 = vsel %vm332_vm0, %v402_v34, 0.0 }
 0x145   : > { %566 = vadd.xlane.f32.xlu0 %v565_v26  ;;  %v425_v39 = vsel %vm332_vm0, %v406_v38, 0.0  ;;  %v1129_v38 = vmov 0   ;;  %vm634_vm0 = vcmask 1040384  }
 0x146   : > { %907 = vset.pattern.permute.xlu0 %v1129_v38  ;;  %906 = vset.pattern.permute.xlu2 %v1129_v38 }
 0x147   : > { %905 = vset.pattern.permute.xlu1 %v1129_v38 }
 0x149   : > { %420 = vadd.xlane.f32.xlu2 %v419_v30  ;;  %495 = vadd.xlane.f32.xlu1 %v494_v29 }
 0x14d   : > { %492 = vadd.xlane.f32.xlu0 %v491_v32 }
 0x151   : > { %432 = vadd.xlane.f32.xlu2 %v431_v36  ;;  %414 = vadd.xlane.f32.xlu1 %v413_v37 }
 0x155   : > { %426 = vadd.xlane.f32.xlu0 %v425_v39 }
 0x159   : > { %504 = vadd.xlane.f32.xlu1 %v503_v40  ;;  %507 = vadd.xlane.f32.xlu2 %v506_v41  ;;  %v562_v41 = vld [vmem:[#allocation4] sm:$0x1] }
 0x15d   : > { %501 = vadd.xlane.f32.xlu0 %v500_v42 }
 0x161   : > { %513 = vadd.xlane.f32.xlu1 %v512_v43 }
 0x165   : > { %510 = vadd.xlane.f32.xlu0 %v509_v44 }
 0x1ac   : > { %v424_v45 = vpop.xlane.xlu2 %423  ;;  %v418_v46 = vpop.xlane.xlu1 %417 }
 0x1ad   : > { %v412_v47 = vpop.xlane.xlu0 %411  ;;  %v449_v5 = vperm.slane %v418_v46, %v1327_v59  ;;  %v452_v9 = vperm.slane %v424_v45, %v1327_v59 }
 0x1ae   : > { %v444_v3 = vperm.slane %v412_v47, %v1327_v59 }
 0x1b4   : > { %v499_v48 = vpop.xlane.xlu2 %498  ;;  %v430_v49 = vpop.xlane.xlu1 %429 }
 0x1b5   : > { %v455_v11 = vperm.slane %v430_v49, %v1327_v59  ;;  %v526_v23 = vperm.slane %v499_v48, %v1327_v59 }
 0x1b8   : > { %v567_v50 = vpop.xlane.xlu0 %566 }
 0x1b9   : > { %v568_v51 = vrot.slane %v567_v50, 4 }
 0x1bb   : > { %v569_v52 = vadd.f32 %v568_v51, %v567_v50 }
 0x1bc   : > { %v421_v54 = vpop.xlane.xlu2 %420  ;;  %v496_v55 = vpop.xlane.xlu1 %495 }
 0x1bd   : > { %v570_v56 = vrot.slane %v569_v52, 2  ;;  %v450_v4 = vperm.slane %v421_v54, %v445_v62  ;;  %v524_v24 = vperm.slane %v496_v55, %v445_v62 }
 0x1bf   : > { %v571_v57 = vadd.f32 %v570_v56, %v569_v52  ;;  %v451_v12 = vsel %vm447_vm2, %v450_v4, %v449_v5 }
 0x1c0   : > { %v493_v60 = vpop.xlane.xlu0 %492 }
 0x1c1   : > { %v572_v61 = vrot.slane %v571_v57, 1  ;;  %v523_v25 = vperm.slane %v493_v60, %v1327_v59 }
 0x1c3   : > { %v573_v63 = vadd.f32 %v572_v61, %v571_v57  ;;  %v525_v30 = vsel %vm447_vm2, %v524_v24, %v523_v25 }
 0x1c4   : > { %v415_v0 = vpop.xlane.xlu1 %414  ;;  %v433_v1 = vpop.xlane.xlu2 %432 }
 0x1c5   : > { %v446_v2 = vperm.slane %v415_v0, %v445_v62  ;;  %811 = vpush %v573_v63  ;;  %v456_v6 = vperm.slane %v433_v1, %v445_v62 }
 0x1c7   : > { %v448_v7 = vsel %vm447_vm2, %v446_v2, %v444_v3  ;;  %v457_v15 = vsel %vm447_vm2, %v456_v6, %v455_v11  ;;  %v490_v3 = vld [vmem:[#allocation3] sm:$0x1]  ;;  %v409_v11 = vld [vmem:[#allocation2] sm:$0x1] }
 0x1c8   : > { %v427_v8 = vpop.xlane.xlu0 %426  ;;  %v459_v14 = vsel %vm458_vm3, %v451_v12, %v448_v7 }
 0x1c9   : > { %v453_v10 = vperm.slane %v427_v8, %v445_v62 }
 0x1cb   : > { %v454_v13 = vsel %vm447_vm2, %v453_v10, %v452_v9 }
 0x1cc   : > { %v461_v16 = vsel %vm460_vm4, %v454_v13, %v459_v14  ;;  %v505_v17 = vpop.xlane.xlu1 %504  ;;  %v508_v22 = vpop.xlane.xlu2 %507 }
 0x1cd   : > { %v463_v18 = vsel %vm462_vm5, %v457_v15, %v461_v16  ;;  %v529_v26 = vperm.slane %v505_v17, %v1327_v59  ;;  %v530_v27 = vperm.slane %v508_v22, %v445_v62 }
 0x1ce   : > { %v466_v19 = vsel %vm465_vm6, %v463_v18, 0.0 }
 0x1cf   : > { %467 = vadd.xlane.f32.xlu2 %v466_v19  ;;  %v531_v32 = vsel %vm447_vm2, %v530_v27, %v529_v26 }
 0x1d0   : > { %v502_v20 = vpop.xlane.xlu0 %501 }
 0x1d1   : > { %v527_v21 = vperm.slane %v502_v20, %v445_v62 }
 0x1d3   : > { %v528_v29 = vsel %vm447_vm2, %v527_v21, %v526_v23 }
 0x1d4   : > { %v514_v28 = vpop.xlane.xlu1 %513  ;;  %v535_v34 = vsel %vm458_vm3, %v528_v29, %v525_v30 }
 0x1d5   : > { %v533_v31 = vperm.slane %v514_v28, %v445_v62  ;;  %v536_v37 = vsel %vm460_vm4, %v531_v32, %v535_v34 }
 0x1d8   : > { %v511_v33 = vpop.xlane.xlu0 %510 }
 0x1d9   : > { %v532_v35 = vperm.slane %v511_v33, %v1327_v59 }
 0x1db   : > { %v534_v36 = vsel %vm447_vm2, %v533_v31, %v532_v35 }
 0x1dc   : > { %v537_v39 = vsel %vm462_vm5, %v534_v36, %v536_v37 }
 0x1dd   : > { %v539_v40 = vsel %vm465_vm6, %v537_v39, 0.0 }
 0x1de   : > { %540 = vadd.xlane.f32.xlu0 %v539_v40 }
 0x1f6   : > { %s812_s23 = spop %811 }
 0x1f7   : > { %v575_v42 = vstv %s812_s23 }
 0x1f8   : > { %v576_v43 = vadd.f32 %v575_v42, %v562_v41 }
 0x1fa   : > { %578 = vst.msk [vmem:[#allocation4] sm:$0x1] %vm326_vm1, %v576_v43  ;;  %vm636_vm1 = vcmask 25600  }
 0x201   : > { %v582_v44 = vld [vmem:[#allocation4] sm:$0x1] }
 0x202   : > { %v584_v45 = vadd.f32 1e-05, %v582_v44  ;;  %v608_v46 = vsub.f32 256.0, %v582_v44 }
 0x204   : > { %587 = vperm.xlu0 %907, %v584_v45   ;;  %v609_v47 = vadd.f32 1e-05, %v608_v46 }
 0x206   : > { %612 = vperm.xlu2 %906, %v609_v47  }
 0x242   : > { %v468_v48 = vpop.xlane.xlu2 %467 }
 0x243   : > { %v470_v49 = vperm.slane %v468_v48, 0  ;;  %v471_v50 = vperm.slane %v468_v48, 1  ;;  %v472_v51 = vperm.slane %v468_v48, 2  ;;  %v473_v52 = vperm.slane %v468_v48, 3 }
 0x245   : > { %474 = vst [vmem:[#allocation1] ss:$9 sm:$0xff] %v470_v49 }
 0x246   : > { %476 = vst [vmem:[#allocation1 + $0x1] ss:$9 sm:$0xff] %v471_v50 }
 0x247   : > { %478 = vst [vmem:[#allocation1 + $0x2] ss:$9 sm:$0xff] %v472_v51 }
 0x248   : > { %480 = vst [vmem:[#allocation1 + $0x3] ss:$9 sm:$0xff] %v473_v52 }
 0x24f   : > { %v481_v53 = vld [vmem:[#allocation1] sm:$0xff] }
 0x250   : > { %483 = vperm.xlu1 %905, %v481_v53  }
 0x251   : > { %v541_v54 = vpop.xlane.xlu0 %540 }
 0x252   : > { %v543_v55 = vperm.slane %v541_v54, 0  ;;  %v544_v56 = vperm.slane %v541_v54, 1  ;;  %v545_v57 = vperm.slane %v541_v54, 2  ;;  %v546_v60 = vperm.slane %v541_v54, 3 }
 0x254   : > { %547 = vst [vmem:[#allocation1] ss:$9 sm:$0xff] %v543_v55 }
 0x255   : > { %549 = vst [vmem:[#allocation1 + $0x1] ss:$9 sm:$0xff] %v544_v56 }
 0x256   : > { %551 = vst [vmem:[#allocation1 + $0x2] ss:$9 sm:$0xff] %v545_v57 }
 0x257   : > { %553 = vst [vmem:[#allocation1 + $0x3] ss:$9 sm:$0xff] %v546_v60 }
 0x25e   : > { %v554_v61 = vld [vmem:[#allocation1] sm:$0xff] }
 0x25f   : > { %556 = vperm.xlu2 %906, %v554_v61  }
 0x260   : > { %v613_v62 = vpop.permute.xlu2 %612 }
 0x261   : > { %v615_v0 = vperm.slane %v613_v62, 0 }
 0x263   : > { %908 = vrcp.f32 %v615_v0  ;;  %v627_v18 = vand.u32 2147483648, %v615_v0  ;;  %vm621_vm9 = vweird.f32 %v615_v0  ;;  %v625_v19 = vand.u32 2147483647, %v615_v0 }
 0x265   : > { %vm626_vm14 = vcmp.eq.f32.partialorder %v625_v19, 8.507059e+37 }
 0x269   : > { %v909_v4 = vpop.eup %908 }
 0x26a   : > { %v617_v8 = vmul.f32 %v909_v4, %v615_v0  ;;  %vm622_vm8 = vweird.f32 %v909_v4 }
 0x26b   : > { %vm623_vm11 = vmor %vm621_vm9, %vm622_vm8 }
 0x26c   : > { %v618_v10 = vsub.f32 1.0, %v617_v8 }
 0x26e   : > { %v619_v14 = vmul.f32 %v909_v4, %v618_v10 }
 0x270   : > { %v620_v17 = vadd.f32 %v909_v4, %v619_v14 }
 0x272   : > { %v624_v22 = vsel %vm623_vm11, %v909_v4, %v620_v17 }
 0x276   : > { %v588_v63 = vpop.permute.xlu0 %587 }
 0x277   : > { %v590_v1 = vperm.slane %v588_v63, 0 }
 0x279   : > { %910 = vrcp.f32 %v590_v1  ;;  %v602_v21 = vand.u32 2147483648, %v590_v1  ;;  %vm596_vm12 = vweird.f32 %v590_v1  ;;  %v600_v23 = vand.u32 2147483647, %v590_v1 }
 0x27b   : > { %v603_v28 = vor.u32 1.1754944e-38, %v602_v21  ;;  %vm601_vm15 = vcmp.eq.f32.partialorder %v600_v23, 8.507059e+37 }
 0x27f   : > { %v911_v6 = vpop.eup %910 }
 0x280   : > { %v592_v9 = vmul.f32 %v911_v6, %v590_v1  ;;  %vm597_vm10 = vweird.f32 %v911_v6 }
 0x281   : > { %vm598_vm13 = vmor %vm596_vm12, %vm597_vm10 }
 0x282   : > { %v593_v12 = vsub.f32 1.0, %v592_v9 }
 0x284   : > { %v594_v16 = vmul.f32 %v911_v6, %v593_v12 }
 0x286   : > { %v595_v20 = vadd.f32 %v911_v6, %v594_v16 }
 0x288   : > { %v599_v26 = vsel %vm598_vm13, %v911_v6, %v595_v20 }
 0x289   : > { %v604_v31 = vsel %vm601_vm15, %v603_v28, %v599_v26 }
 0x2b9   : > { %v557_v2 = vpop.permute.xlu2 %556 }
 0x2ba   : > { %v558_v5 = vperm.slane %v557_v2, %v1327_v59 }
 0x2bc   : > { %v560_v7 = vadd.f32 %v558_v5, %v490_v3 }
 0x2be   : > { %561 = vst.msk [vmem:[#allocation3] sm:$0x1] %vm323_vm7, %v560_v7 }
 0x2c2   : > { %v484_v58 = vpop.permute.xlu1 %483 }
 0x2c3   : > { %v485_v13 = vperm.slane %v484_v58, %v1327_v59  ;;  %v628_v59 = vor.u32 1.1754944e-38, %v627_v18 }
 0x2c5   : > { %v487_v15 = vadd.f32 %v485_v13, %v409_v11  ;;  %v606_v25 = vld [vmem:[#allocation3] sm:$0x1]  ;;  %v629_v29 = vsel %vm626_vm14, %v628_v59, %v624_v22 }
 0x2c7   : > { %489 = vst.msk [vmem:[#allocation2] sm:$0x1] %vm323_vm7, %v487_v15 }
 0x2ce   : > { %v583_v24 = vld [vmem:[#allocation2] sm:$0x1] }
 0x2cf   : > { %v607_v27 = vsub.f32 %v606_v25, %v583_v24  ;;  %v605_v32 = vmul.f32 %v604_v31, %v583_v24 }
 0x2d1   : > { %v630_v30 = vmul.f32 %v629_v29, %v607_v27 }
 0x2d3   : > { %v632_v33 = vperm.slane %v630_v30, 0 }
 0x2d5   : > { %v635_v34 = vsel %vm634_vm0, %v605_v32, %v632_v33 }
 0x2d6   : > { %637 = vst.msk [vmem:[%s316_s18] sm:$0x3] %vm636_vm1, %v635_v34 }
 0x2d7   : > { %1059 = shalt.err (!%p1056_p0)
}
 0x2d8   : > { %825 = dma.vmem_to_hbm [thread:$0]  (%p1244_p7), %s652_s28, 32, %s654_s21, %s639_s8  }
 0x2d9 PF: > { %s665_s2 = sand.u32 1, %s1102_s15   ;;  %p842_p3 = pnand %p784_p11, %p1204_p6 }
 0x2da   : > { %s666_s30 = scalar_lea.sflag [#allocation7], %s665_s2 }
 0x2db   : > { %p843_p5 = pneg %p842_p3 }
 0x2dd   : > { %1097 = dma.done.wait (%p843_p5), %s666_s30, 32  }
 0x2de   : > { %1099 = vsyncadd (%p843_p5), %s666_s30, 4294967264  ;;  %s24_s20 = sadd.s32 1, %s1122_s20   ;;  %s1427_s14 = sld [smem:[#allocation19_spill]] }
 0x2df   : > { %p21_p9 = scmp.ge.s32.totalorder %s24_s20, 4   ;;  %s1428_s27 = sld [smem:[#allocation18_spill]] }
 0x2e0   : > { %s1429_s15 = smov %s1106_s16  ;;  %s1430_s16 = smov %s1110_s17 }
 0x2e1   : > { %s1432_s18 = smov %s1118_s19  ;;  %23 = sbr.rel (!%p21_p9) target bundleno = 12 (0xc), region = 117 }
 0x2e4   : > { %s1431_s17 = smov %s1427_s14 }
 0x2e5   : > { %s1433_s19 = smov %s1428_s27 }
 0x2e6   :  { %672 = vsyncpa [#allocation6], 1 }
 0x2e7   :  { %674 = vsyncpa [#allocation6 + $0x1], 1 }
 0x2e8   :  { %675 = vsyncpa [#allocation9], 1 }
 0x2e9   :  { %676 = vsyncpa [#allocation12], 1 }
 0x2ea   :  { %678 = vsyncpa [#allocation12 + $0x1], 1 }
 0x2eb   :  { %679 = vsyncpa [#allocation7], 1 }
 0x2ec   :  { %681 = vsyncpa [#allocation7 + $0x1], 1 }

</bundles_post_ra>
